<compile_context>
chip_gen: v7x
topology: tpu7x:2x2x1
jax: 0.10.0
libtpu: 0.0.40
codegen_flags: <defaults>
</compile_context>

<pallas_src>
import functools

import jax
import jax.numpy as jnp
from jax.experimental import pallas as pl
from jax.experimental.pallas import tpu as pltpu

DECAY = 0.2
THRESH = 0.2
WIN = 15


def _round_up(x, m):
    return (x + m - 1) // m * m


def lif_kernel(x_ref, w_ref, b_ref, spikes_ref, acc_ref, *, win):
    # fc is accumulated over the K ("arbitrary") grid axis into an f32 VMEM scratch.
    k = pl.program_id(2)

    @pl.when(k == 0)
    def _():
        acc_ref[...] = jnp.zeros_like(acc_ref)

    acc_ref[...] += jnp.dot(x_ref[...], w_ref[...],
                            preferred_element_type=jnp.float32)

    @pl.when(k == pl.num_programs(2) - 1)
    def _():
        out_dtype = spikes_ref.dtype
        fc = acc_ref[...] + b_ref[...]          # (TB, TO) + (1, TO) broadcast

        # Step 0: mem = 0*decay*(1-0) + fc = fc.
        mem = fc
        spike = mem > THRESH                    # bool carry; cast only at the store
        spikes_ref[:, 0, :] = spike.astype(out_dtype)
        for step in range(1, win):
            # mem*decay*(1-spike) + fc  ==  where(spike, fc, mem*decay + fc)   (spike in {0,1})
            mem = jnp.where(spike, fc, mem * DECAY + fc)
            spike = mem > THRESH
            spikes_ref[:, step, :] = spike.astype(out_dtype)


def lif_forward_2d(x, w, b, win=WIN, out_dtype=jnp.float32):
    """x: (batch, in_planes), w: (in_planes, out_planes), b: (out_planes,)
    -> spikes: (batch, win, out_planes) in out_dtype (values are exactly 0/1).
    Pass out_dtype=jnp.bfloat16 to halve the HBM spike writeback (0/1 is exact in bf16)."""
    batch, in_planes = x.shape
    out_planes = w.shape[1]

    # Lane-dense output tiles (multiple of 128), sublane-aligned batch (multiple of 8),
    # K tiled at <=512 so VMEM stays bounded for large in_planes.
    tb = min(128, _round_up(batch, 8))
    to = min(512, _round_up(out_planes, 128))
    tk = in_planes if in_planes <= 512 else 512

    batch_p = _round_up(batch, tb)
    out_p = _round_up(out_planes, to)
    in_p = _round_up(in_planes, tk)

    x_p = x.astype(jnp.float32)
    w_p = w.astype(jnp.float32)
    b_p = b.reshape(1, -1).astype(jnp.float32)
    if batch_p != batch or in_p != in_planes:
        x_p = jnp.pad(x_p, ((0, batch_p - batch), (0, in_p - in_planes)))
    if in_p != in_planes or out_p != out_planes:
        w_p = jnp.pad(w_p, ((0, in_p - in_planes), (0, out_p - out_planes)))
    if out_p != out_planes:
        b_p = jnp.pad(b_p, ((0, 0), (0, out_p - out_planes)))

    n_i = batch_p // tb
    n_j = out_p // to
    n_k = in_p // tk

    x_bytes = batch_p * in_p * 4
    w_bytes = in_p * out_p * 4

    # Grid-axis order: with a single K step the operand whose block index is constant
    # through the inner sweep is fetched from HBM only once (Pallas skips same-block
    # re-fetch); pick the order that re-reads the cheaper operand. With n_k > 1 both
    # operands change every step, so the order does not change HBM traffic.
    if n_k == 1 and x_bytes * (n_j - 1) < w_bytes * (n_i - 1):
        grid = (n_j, n_i, n_k)                          # batch inner: W read once
        x_map = lambda j, i, k: (i, k)
        w_map = lambda j, i, k: (k, j)
        b_map = lambda j, i, k: (0, j)
        o_map = lambda j, i, k: (i, 0, j)
        x_reads, w_reads = n_j, 1
    else:
        grid = (n_i, n_j, n_k)                          # out inner (default)
        x_map = lambda i, j, k: (i, k)
        w_map = lambda i, j, k: (k, j)
        b_map = lambda i, j, k: (0, j)
        o_map = lambda i, j, k: (i, 0, j)
        x_reads = 1 if n_k == 1 else n_j
        w_reads = n_i

    kernel = functools.partial(lif_kernel, win=win)
    out_itemsize = jnp.dtype(out_dtype).itemsize
    flops = 2 * batch_p * in_p * out_p + 4 * win * batch_p * out_p
    bytes_accessed = (x_bytes * x_reads + w_bytes * w_reads + out_p * 4
                      + batch_p * win * out_p * out_itemsize)

    # TODO(synk): for bf16/int8 output dtypes, pairing time steps per store would keep
    # packed sublanes dense; single-sublane stores are kept here for maximum portability.
    spikes = pl.pallas_call(
        kernel,
        out_shape=jax.ShapeDtypeStruct((batch_p, win, out_p), out_dtype),
        grid=grid,
        in_specs=[
            pl.BlockSpec((tb, tk), x_map),
            pl.BlockSpec((tk, to), w_map),
            pl.BlockSpec((1, to), b_map),
        ],
        out_specs=pl.BlockSpec((tb, win, to), o_map),
        scratch_shapes=[pltpu.VMEM((tb, to), jnp.float32)],
        compiler_params=pltpu.CompilerParams(
            dimension_semantics=("parallel", "parallel", "arbitrary"),
            vmem_limit_bytes=48 << 20,
        ),
        cost_estimate=pl.CostEstimate(
            flops=flops, transcendentals=0, bytes_accessed=bytes_accessed),
    )(x_p, w_p, b_p)

    # Slice off tiling padding. (Padded batch rows see fc = b and would spike if a bias
    # ever exceeded thresh — harmless because they are sliced off right here.)
    return spikes[:batch, :, :out_planes]


def lif_forward(x, w, b, win=WIN, out_dtype=jnp.float32):
    """Matches LIF_neuron.forward: 2D input -> (B, win, out); 3D input -> (T, B, win, out)."""
    if x.ndim == 2:
        return lif_forward_2d(x, w, b, win=win, out_dtype=out_dtype)
    elif x.ndim == 3:
        T, B, F = x.shape
        flat = x.reshape(T * B, F)
        spikes = lif_forward_2d(flat, w, b, win=win, out_dtype=out_dtype)  # (T*B, win, out)
        return spikes.reshape(T, B, win, w.shape[1])
    else:
        raise ValueError("expected 2D or 3D input")


def make_params(key, in_planes, out_planes):
    # xavier_uniform_(weight, gain=1): U(-a, a), a = sqrt(6 / (fan_in + fan_out)); bias = 0.
    a = (6.0 / (in_planes + out_planes)) ** 0.5
    # PyTorch weight is (out, in); we keep it transposed as (in, out) for the kernel.
    w = jax.random.uniform(key, (in_planes, out_planes), jnp.float32, minval=-a, maxval=a)
    b = jnp.zeros((out_planes,), jnp.float32)
    return w, b


def reference_forward_2d(x, w, b, win=WIN):
    # Pure-JAX reference of the PyTorch forward (2D path).
    fc = x @ w + b
    mem = jnp.zeros_like(fc)
    spike = jnp.zeros_like(fc)
    outs = []
    for _ in range(win):
        mem = mem * DECAY * (1.0 - spike) + fc
        spike = (mem - THRESH > 0.0).astype(jnp.float32)
        outs.append(spike)
    return jnp.stack(outs, axis=1)  # (batch, win, out)


if __name__ == "__main__":
    key = jax.random.PRNGKey(0)
    k_w, k_x2, k_x3, k_wb, k_xb = jax.random.split(key, 5)

    # --- Small 2D / 3D path (single K step, heavy padding) ---
    batch, in_planes, out_planes, win = 2, 16, 32, 15
    w, b = make_params(k_w, in_planes, out_planes)

    x2 = jax.random.normal(k_x2, (batch, in_planes), jnp.float32)
    s2 = jax.block_until_ready(lif_forward(x2, w, b, win=win))
    assert s2.shape == (batch, win, out_planes), s2.shape
    ref2 = reference_forward_2d(x2, w, b, win=win)
    assert jnp.allclose(s2, ref2, atol=1e-5), "2D mismatch vs reference"

    T = 3
    x3 = jax.random.normal(k_x3, (T, batch, in_planes), jnp.float32)
    s3 = jax.block_until_ready(lif_forward(x3, w, b, win=win))
    assert s3.shape == (T, batch, win, out_planes), s3.shape
    ref3 = reference_forward_2d(x3.reshape(T * batch, in_planes), w, b, win=win)
    ref3 = ref3.reshape(T, batch, win, out_planes)
    assert jnp.allclose(s3, ref3, atol=1e-5), "3D mismatch vs reference"

    # --- Larger 2D path exercising the K grid axis (in_planes > 512) and padding ---
    batch_b, in_b, out_b = 20, 600, 200
    w_b, b_b = make_params(k_wb, in_b, out_b)
    x_b = jax.random.normal(k_xb, (batch_b, in_b), jnp.float32)
    s_b = jax.block_until_ready(lif_forward(x_b, w_b, b_b, win=win))
    assert s_b.shape == (batch_b, win, out_b), s_b.shape
    ref_b = reference_forward_2d(x_b, w_b, b_b, win=win)
    assert jnp.allclose(s_b, ref_b, atol=1e-5), "K-axis path mismatch vs reference"

    print("KERNEL_OK")
</pallas_src>

<mosaic_0001>
module attributes {stable_mosaic.version = 11 : i64} {
  func.func @lif_kernel(%arg0: i32, %arg1: i32, %arg2: i32, %arg3: memref<8x16xf32, #tpu.memory_space<vmem>>, %arg4: memref<16x128xf32, #tpu.memory_space<vmem>>, %arg5: memref<1x128xf32, #tpu.memory_space<vmem>>, %arg6: memref<8x15x128xf32, #tpu.memory_space<vmem>>, %arg7: memref<8x128xf32, #tpu.memory_space<vmem>>) attributes {dimension_semantics = [#tpu.dimension_semantics<parallel>, #tpu.dimension_semantics<parallel>, #tpu.dimension_semantics<arbitrary>], iteration_bounds = array<i64: 1, 1, 1>, scalar_prefetch = 0 : i64, scratch_operands = 1 : i64, tpu.core_type = #tpu.core_type<tc>, window_params = [{transform_indices = @transform_0, window_bounds = array<i64: 8, 16>}, {transform_indices = @transform_1, window_bounds = array<i64: 16, 128>}, {transform_indices = @transform_2, window_bounds = array<i64: 1, 128>}, {transform_indices = @transform_3, window_bounds = array<i64: 8, 15, 128>}]} {
    %c0_i32 = arith.constant 0 : i32
    %0 = arith.cmpi eq, %arg2, %c0_i32 : i32
    %1 = arith.extui %0 : i1 to i32
    %c0_i32_0 = arith.constant 0 : i32
    %2 = arith.cmpi ne, %1, %c0_i32_0 : i32
    scf.if %2 {
      %cst_10 = arith.constant 0.000000e+00 : f32
      %12 = vector.broadcast %cst_10 : f32 to vector<8x128xf32>
      %c0_11 = arith.constant 0 : index
      %c0_12 = arith.constant 0 : index
      %13 = vector.load %arg7[%c0_11, %c0_12] : memref<8x128xf32, #tpu.memory_space<vmem>>, vector<8x128xf32>
      tpu.vector_store %arg7[%c0_11, %c0_12], %12 {strides = array<i32>} : memref<8x128xf32, #tpu.memory_space<vmem>>, vector<8x128xf32>,
    } else {
    }
    %c0 = arith.constant 0 : index
    %c0_1 = arith.constant 0 : index
    %3 = vector.load %arg7[%c0, %c0_1] : memref<8x128xf32, #tpu.memory_space<vmem>>, vector<8x128xf32>
    %c0_2 = arith.constant 0 : index
    %c0_3 = arith.constant 0 : index
    %4 = vector.load %arg3[%c0_2, %c0_3] : memref<8x16xf32, #tpu.memory_space<vmem>>, vector<8x16xf32>
    %c0_4 = arith.constant 0 : index
    %c0_5 = arith.constant 0 : index
    %5 = vector.load %arg4[%c0_4, %c0_5] : memref<16x128xf32, #tpu.memory_space<vmem>>, vector<16x128xf32>
    %cst = arith.constant dense<0.000000e+00> : vector<8x128xf32>
    %6 = tpu.matmul %4, %5, %cst {dimension_numbers = #tpu.dot_dimension_numbers<[1], [0], [0], [1], [0, 0, 1, 1], [], []>} : vector<8x16xf32>, vector<16x128xf32>, vector<8x128xf32> -> vector<8x128xf32>
    %7 = arith.addf %3, %6 : vector<8x128xf32>
    %c0_6 = arith.constant 0 : index
    %c0_7 = arith.constant 0 : index
    %8 = vector.load %arg7[%c0_6, %c0_7] : memref<8x128xf32, #tpu.memory_space<vmem>>, vector<8x128xf32>
    tpu.vector_store %arg7[%c0_6, %c0_7], %7 {strides = array<i32>} : memref<8x128xf32, #tpu.memory_space<vmem>>, vector<8x128xf32>,
    %c0_i32_8 = arith.constant 0 : i32
    %9 = arith.cmpi eq, %arg2, %c0_i32_8 : i32
    %10 = arith.extui %9 : i1 to i32
    %c0_i32_9 = arith.constant 0 : i32
    %11 = arith.cmpi ne, %10, %c0_i32_9 : i32
    scf.if %11 {
      %c0_10 = arith.constant 0 : index
      %c0_11 = arith.constant 0 : index
      %12 = vector.load %arg7[%c0_10, %c0_11] : memref<8x128xf32, #tpu.memory_space<vmem>>, vector<8x128xf32>
      %c0_12 = arith.constant 0 : index
      %c0_13 = arith.constant 0 : index
      %13 = vector.load %arg5[%c0_12, %c0_13] : memref<1x128xf32, #tpu.memory_space<vmem>>, vector<1x128xf32>
      %14 = vector.broadcast %13 : vector<1x128xf32> to vector<8x128xf32>
      %15 = arith.addf %12, %14 : vector<8x128xf32>
      %cst_14 = arith.constant 2.000000e-01 : f32
      %16 = vector.broadcast %cst_14 : f32 to vector<8x128xf32>
      %17 = arith.cmpf ogt, %15, %16 : vector<8x128xf32>
      %18 = arith.extui %17 : vector<8x128xi1> to vector<8x128xi32>
      %19 = arith.sitofp %18 : vector<8x128xi32> to vector<8x128xf32>
      %c0_15 = arith.constant 0 : index
      %c0_16 = arith.constant 0 : index
      %c0_17 = arith.constant 0 : index
      %20 = vector.load %arg6[%c0_15, %c0_16, %c0_17] : memref<8x15x128xf32, #tpu.memory_space<vmem>>, vector<8x1x128xf32>
      %21 = vector.shape_cast %20 : vector<8x1x128xf32> to vector<8x128xf32>
      %22 = vector.shape_cast %19 : vector<8x128xf32> to vector<8x1x128xf32>
      tpu.vector_store %arg6[%c0_15, %c0_16, %c0_17], %22 {strides = array<i32>} : memref<8x15x128xf32, #tpu.memory_space<vmem>>, vector<8x1x128xf32>,
      %cst_18 = arith.constant 2.000000e-01 : f32
      %23 = vector.broadcast %cst_18 : f32 to vector<8x128xf32>
      %24 = arith.mulf %15, %23 : vector<8x128xf32>
      %25 = arith.addf %24, %15 : vector<8x128xf32>
      %26 = arith.select %17, %15, %25 : vector<8x128xi1>, vector<8x128xf32>
      %cst_19 = arith.constant 2.000000e-01 : f32
      %27 = vector.broadcast %cst_19 : f32 to vector<8x128xf32>
      %28 = arith.cmpf ogt, %26, %27 : vector<8x128xf32>
      %29 = arith.extui %28 : vector<8x128xi1> to vector<8x128xi32>
      %30 = arith.sitofp %29 : vector<8x128xi32> to vector<8x128xf32>
      %c0_20 = arith.constant 0 : index
      %c1 = arith.constant 1 : index
      %c0_21 = arith.constant 0 : index
      %31 = vector.load %arg6[%c0_20, %c1, %c0_21] : memref<8x15x128xf32, #tpu.memory_space<vmem>>, vector<8x1x128xf32>
      %32 = vector.shape_cast %31 : vector<8x1x128xf32> to vector<8x128xf32>
      %33 = vector.shape_cast %30 : vector<8x128xf32> to vector<8x1x128xf32>
      tpu.vector_store %arg6[%c0_20, %c1, %c0_21], %33 {strides = array<i32>} : memref<8x15x128xf32, #tpu.memory_space<vmem>>, vector<8x1x128xf32>,
      %cst_22 = arith.constant 2.000000e-01 : f32
      %34 = vector.broadcast %cst_22 : f32 to vector<8x128xf32>
      %35 = arith.mulf %26, %34 : vector<8x128xf32>
      %36 = arith.addf %35, %15 : vector<8x128xf32>
      %37 = arith.select %28, %15, %36 : vector<8x128xi1>, vector<8x128xf32>
      %cst_23 = arith.constant 2.000000e-01 : f32
      %38 = vector.broadcast %cst_23 : f32 to vector<8x128xf32>
      %39 = arith.cmpf ogt, %37, %38 : vector<8x128xf32>
      %40 = arith.extui %39 : vector<8x128xi1> to vector<8x128xi32>
      %41 = arith.sitofp %40 : vector<8x128xi32> to vector<8x128xf32>
      %c0_24 = arith.constant 0 : index
      %c2 = arith.constant 2 : index
      %c0_25 = arith.constant 0 : index
      %42 = vector.load %arg6[%c0_24, %c2, %c0_25] : memref<8x15x128xf32, #tpu.memory_space<vmem>>, vector<8x1x128xf32>
      %43 = vector.shape_cast %42 : vector<8x1x128xf32> to vector<8x128xf32>
      %44 = vector.shape_cast %41 : vector<8x128xf32> to vector<8x1x128xf32>
      tpu.vector_store %arg6[%c0_24, %c2, %c0_25], %44 {strides = array<i32>} : memref<8x15x128xf32, #tpu.memory_space<vmem>>, vector<8x1x128xf32>,
      %cst_26 = arith.constant 2.000000e-01 : f32
      %45 = vector.broadcast %cst_26 : f32 to vector<8x128xf32>
      %46 = arith.mulf %37, %45 : vector<8x128xf32>
      %47 = arith.addf %46, %15 : vector<8x128xf32>
      %48 = arith.select %39, %15, %47 : vector<8x128xi1>, vector<8x128xf32>
      %cst_27 = arith.constant 2.000000e-01 : f32
      %49 = vector.broadcast %cst_27 : f32 to vector<8x128xf32>
      %50 = arith.cmpf ogt, %48, %49 : vector<8x128xf32>
      %51 = arith.extui %50 : vector<8x128xi1> to vector<8x128xi32>
      %52 = arith.sitofp %51 : vector<8x128xi32> to vector<8x128xf32>
      %c0_28 = arith.constant 0 : index
      %c3 = arith.constant 3 : index
      %c0_29 = arith.constant 0 : index
      %53 = vector.load %arg6[%c0_28, %c3, %c0_29] : memref<8x15x128xf32, #tpu.memory_space<vmem>>, vector<8x1x128xf32>
      %54 = vector.shape_cast %53 : vector<8x1x128xf32> to vector<8x128xf32>
      %55 = vector.shape_cast %52 : vector<8x128xf32> to vector<8x1x128xf32>
      tpu.vector_store %arg6[%c0_28, %c3, %c0_29], %55 {strides = array<i32>} : memref<8x15x128xf32, #tpu.memory_space<vmem>>, vector<8x1x128xf32>,
      %cst_30 = arith.constant 2.000000e-01 : f32
      %56 = vector.broadcast %cst_30 : f32 to vector<8x128xf32>
      %57 = arith.mulf %48, %56 : vector<8x128xf32>
      %58 = arith.addf %57, %15 : vector<8x128xf32>
      %59 = arith.select %50, %15, %58 : vector<8x128xi1>, vector<8x128xf32>
      %cst_31 = arith.constant 2.000000e-01 : f32
      %60 = vector.broadcast %cst_31 : f32 to vector<8x128xf32>
      %61 = arith.cmpf ogt, %59, %60 : vector<8x128xf32>
      %62 = arith.extui %61 : vector<8x128xi1> to vector<8x128xi32>
      %63 = arith.sitofp %62 : vector<8x128xi32> to vector<8x128xf32>
      %c0_32 = arith.constant 0 : index
      %c4 = arith.constant 4 : index
      %c0_33 = arith.constant 0 : index
      %64 = vector.load %arg6[%c0_32, %c4, %c0_33] : memref<8x15x128xf32, #tpu.memory_space<vmem>>, vector<8x1x128xf32>
      %65 = vector.shape_cast %64 : vector<8x1x128xf32> to vector<8x128xf32>
      %66 = vector.shape_cast %63 : vector<8x128xf32> to vector<8x1x128xf32>
      tpu.vector_store %arg6[%c0_32, %c4, %c0_33], %66 {strides = array<i32>} : memref<8x15x128xf32, #tpu.memory_space<vmem>>, vector<8x1x128xf32>,
      %cst_34 = arith.constant 2.000000e-01 : f32
      %67 = vector.broadcast %cst_34 : f32 to vector<8x128xf32>
      %68 = arith.mulf %59, %67 : vector<8x128xf32>
      %69 = arith.addf %68, %15 : vector<8x128xf32>
      %70 = arith.select %61, %15, %69 : vector<8x128xi1>, vector<8x128xf32>
      %cst_35 = arith.constant 2.000000e-01 : f32
      %71 = vector.broadcast %cst_35 : f32 to vector<8x128xf32>
      %72 = arith.cmpf ogt, %70, %71 : vector<8x128xf32>
      %73 = arith.extui %72 : vector<8x128xi1> to vector<8x128xi32>
      %74 = arith.sitofp %73 : vector<8x128xi32> to vector<8x128xf32>
      %c0_36 = arith.constant 0 : index
      %c5 = arith.constant 5 : index
      %c0_37 = arith.constant 0 : index
      %75 = vector.load %arg6[%c0_36, %c5, %c0_37] : memref<8x15x128xf32, #tpu.memory_space<vmem>>, vector<8x1x128xf32>
      %76 = vector.shape_cast %75 : vector<8x1x128xf32> to vector<8x128xf32>
      %77 = vector.shape_cast %74 : vector<8x128xf32> to vector<8x1x128xf32>
      tpu.vector_store %arg6[%c0_36, %c5, %c0_37], %77 {strides = array<i32>} : memref<8x15x128xf32, #tpu.memory_space<vmem>>, vector<8x1x128xf32>,
      %cst_38 = arith.constant 2.000000e-01 : f32
      %78 = vector.broadcast %cst_38 : f32 to vector<8x128xf32>
      %79 = arith.mulf %70, %78 : vector<8x128xf32>
      %80 = arith.addf %79, %15 : vector<8x128xf32>
      %81 = arith.select %72, %15, %80 : vector<8x128xi1>, vector<8x128xf32>
      %cst_39 = arith.constant 2.000000e-01 : f32
      %82 = vector.broadcast %cst_39 : f32 to vector<8x128xf32>
      %83 = arith.cmpf ogt, %81, %82 : vector<8x128xf32>
      %84 = arith.extui %83 : vector<8x128xi1> to vector<8x128xi32>
      %85 = arith.sitofp %84 : vector<8x128xi32> to vector<8x128xf32>
      %c0_40 = arith.constant 0 : index
      %c6 = arith.constant 6 : index
      %c0_41 = arith.constant 0 : index
      %86 = vector.load %arg6[%c0_40, %c6, %c0_41] : memref<8x15x128xf32, #tpu.memory_space<vmem>>, vector<8x1x128xf32>
      %87 = vector.shape_cast %86 : vector<8x1x128xf32> to vector<8x128xf32>
      %88 = vector.shape_cast %85 : vector<8x128xf32> to vector<8x1x128xf32>
      tpu.vector_store %arg6[%c0_40, %c6, %c0_41], %88 {strides = array<i32>} : memref<8x15x128xf32, #tpu.memory_space<vmem>>, vector<8x1x128xf32>,
      %cst_42 = arith.constant 2.000000e-01 : f32
      %89 = vector.broadcast %cst_42 : f32 to vector<8x128xf32>
      %90 = arith.mulf %81, %89 : vector<8x128xf32>
      %91 = arith.addf %90, %15 : vector<8x128xf32>
      %92 = arith.select %83, %15, %91 : vector<8x128xi1>, vector<8x128xf32>
      %cst_43 = arith.constant 2.000000e-01 : f32
      %93 = vector.broadcast %cst_43 : f32 to vector<8x128xf32>
      %94 = arith.cmpf ogt, %92, %93 : vector<8x128xf32>
      %95 = arith.extui %94 : vector<8x128xi1> to vector<8x128xi32>
      %96 = arith.sitofp %95 : vector<8x128xi32> to vector<8x128xf32>
      %c0_44 = arith.constant 0 : index
      %c7 = arith.constant 7 : index
      %c0_45 = arith.constant 0 : index
      %97 = vector.load %arg6[%c0_44, %c7, %c0_45] : memref<8x15x128xf32, #tpu.memory_space<vmem>>, vector<8x1x128xf32>
      %98 = vector.shape_cast %97 : vector<8x1x128xf32> to vector<8x128xf32>
      %99 = vector.shape_cast %96 : vector<8x128xf32> to vector<8x1x128xf32>
      tpu.vector_store %arg6[%c0_44, %c7, %c0_45], %99 {strides = array<i32>} : memref<8x15x128xf32, #tpu.memory_space<vmem>>, vector<8x1x128xf32>,
      %cst_46 = arith.constant 2.000000e-01 : f32
      %100 = vector.broadcast %cst_46 : f32 to vector<8x128xf32>
      %101 = arith.mulf %92, %100 : vector<8x128xf32>
      %102 = arith.addf %101, %15 : vector<8x128xf32>
      %103 = arith.select %94, %15, %102 : vector<8x128xi1>, vector<8x128xf32>
      %cst_47 = arith.constant 2.000000e-01 : f32
      %104 = vector.broadcast %cst_47 : f32 to vector<8x128xf32>
      %105 = arith.cmpf ogt, %103, %104 : vector<8x128xf32>
      %106 = arith.extui %105 : vector<8x128xi1> to vector<8x128xi32>
      %107 = arith.sitofp %106 : vector<8x128xi32> to vector<8x128xf32>
      %c0_48 = arith.constant 0 : index
      %c8 = arith.constant 8 : index
      %c0_49 = arith.constant 0 : index
      %108 = vector.load %arg6[%c0_48, %c8, %c0_49] : memref<8x15x128xf32, #tpu.memory_space<vmem>>, vector<8x1x128xf32>
      %109 = vector.shape_cast %108 : vector<8x1x128xf32> to vector<8x128xf32>
      %110 = vector.shape_cast %107 : vector<8x128xf32> to vector<8x1x128xf32>
      tpu.vector_store %arg6[%c0_48, %c8, %c0_49], %110 {strides = array<i32>} : memref<8x15x128xf32, #tpu.memory_space<vmem>>, vector<8x1x128xf32>,
      %cst_50 = arith.constant 2.000000e-01 : f32
      %111 = vector.broadcast %cst_50 : f32 to vector<8x128xf32>
      %112 = arith.mulf %103, %111 : vector<8x128xf32>
      %113 = arith.addf %112, %15 : vector<8x128xf32>
      %114 = arith.select %105, %15, %113 : vector<8x128xi1>, vector<8x128xf32>
      %cst_51 = arith.constant 2.000000e-01 : f32
      %115 = vector.broadcast %cst_51 : f32 to vector<8x128xf32>
      %116 = arith.cmpf ogt, %114, %115 : vector<8x128xf32>
      %117 = arith.extui %116 : vector<8x128xi1> to vector<8x128xi32>
      %118 = arith.sitofp %117 : vector<8x128xi32> to vector<8x128xf32>
      %c0_52 = arith.constant 0 : index
      %c9 = arith.constant 9 : index
      %c0_53 = arith.constant 0 : index
      %119 = vector.load %arg6[%c0_52, %c9, %c0_53] : memref<8x15x128xf32, #tpu.memory_space<vmem>>, vector<8x1x128xf32>
      %120 = vector.shape_cast %119 : vector<8x1x128xf32> to vector<8x128xf32>
      %121 = vector.shape_cast %118 : vector<8x128xf32> to vector<8x1x128xf32>
      tpu.vector_store %arg6[%c0_52, %c9, %c0_53], %121 {strides = array<i32>} : memref<8x15x128xf32, #tpu.memory_space<vmem>>, vector<8x1x128xf32>,
      %cst_54 = arith.constant 2.000000e-01 : f32
      %122 = vector.broadcast %cst_54 : f32 to vector<8x128xf32>
      %123 = arith.mulf %114, %122 : vector<8x128xf32>
      %124 = arith.addf %123, %15 : vector<8x128xf32>
      %125 = arith.select %116, %15, %124 : vector<8x128xi1>, vector<8x128xf32>
      %cst_55 = arith.constant 2.000000e-01 : f32
      %126 = vector.broadcast %cst_55 : f32 to vector<8x128xf32>
      %127 = arith.cmpf ogt, %125, %126 : vector<8x128xf32>
      %128 = arith.extui %127 : vector<8x128xi1> to vector<8x128xi32>
      %129 = arith.sitofp %128 : vector<8x128xi32> to vector<8x128xf32>
      %c0_56 = arith.constant 0 : index
      %c10 = arith.constant 10 : index
      %c0_57 = arith.constant 0 : index
      %130 = vector.load %arg6[%c0_56, %c10, %c0_57] : memref<8x15x128xf32, #tpu.memory_space<vmem>>, vector<8x1x128xf32>
      %131 = vector.shape_cast %130 : vector<8x1x128xf32> to vector<8x128xf32>
      %132 = vector.shape_cast %129 : vector<8x128xf32> to vector<8x1x128xf32>
      tpu.vector_store %arg6[%c0_56, %c10, %c0_57], %132 {strides = array<i32>} : memref<8x15x128xf32, #tpu.memory_space<vmem>>, vector<8x1x128xf32>,
      %cst_58 = arith.constant 2.000000e-01 : f32
      %133 = vector.broadcast %cst_58 : f32 to vector<8x128xf32>
      %134 = arith.mulf %125, %133 : vector<8x128xf32>
      %135 = arith.addf %134, %15 : vector<8x128xf32>
      %136 = arith.select %127, %15, %135 : vector<8x128xi1>, vector<8x128xf32>
      %cst_59 = arith.constant 2.000000e-01 : f32
      %137 = vector.broadcast %cst_59 : f32 to vector<8x128xf32>
      %138 = arith.cmpf ogt, %136, %137 : vector<8x128xf32>
      %139 = arith.extui %138 : vector<8x128xi1> to vector<8x128xi32>
      %140 = arith.sitofp %139 : vector<8x128xi32> to vector<8x128xf32>
      %c0_60 = arith.constant 0 : index
      %c11 = arith.constant 11 : index
      %c0_61 = arith.constant 0 : index
      %141 = vector.load %arg6[%c0_60, %c11, %c0_61] : memref<8x15x128xf32, #tpu.memory_space<vmem>>, vector<8x1x128xf32>
      %142 = vector.shape_cast %141 : vector<8x1x128xf32> to vector<8x128xf32>
      %143 = vector.shape_cast %140 : vector<8x128xf32> to vector<8x1x128xf32>
      tpu.vector_store %arg6[%c0_60, %c11, %c0_61], %143 {strides = array<i32>} : memref<8x15x128xf32, #tpu.memory_space<vmem>>, vector<8x1x128xf32>,
      %cst_62 = arith.constant 2.000000e-01 : f32
      %144 = vector.broadcast %cst_62 : f32 to vector<8x128xf32>
      %145 = arith.mulf %136, %144 : vector<8x128xf32>
      %146 = arith.addf %145, %15 : vector<8x128xf32>
      %147 = arith.select %138, %15, %146 : vector<8x128xi1>, vector<8x128xf32>
      %cst_63 = arith.constant 2.000000e-01 : f32
      %148 = vector.broadcast %cst_63 : f32 to vector<8x128xf32>
      %149 = arith.cmpf ogt, %147, %148 : vector<8x128xf32>
      %150 = arith.extui %149 : vector<8x128xi1> to vector<8x128xi32>
      %151 = arith.sitofp %150 : vector<8x128xi32> to vector<8x128xf32>
      %c0_64 = arith.constant 0 : index
      %c12 = arith.constant 12 : index
      %c0_65 = arith.constant 0 : index
      %152 = vector.load %arg6[%c0_64, %c12, %c0_65] : memref<8x15x128xf32, #tpu.memory_space<vmem>>, vector<8x1x128xf32>
      %153 = vector.shape_cast %152 : vector<8x1x128xf32> to vector<8x128xf32>
      %154 = vector.shape_cast %151 : vector<8x128xf32> to vector<8x1x128xf32>
      tpu.vector_store %arg6[%c0_64, %c12, %c0_65], %154 {strides = array<i32>} : memref<8x15x128xf32, #tpu.memory_space<vmem>>, vector<8x1x128xf32>,
      %cst_66 = arith.constant 2.000000e-01 : f32
      %155 = vector.broadcast %cst_66 : f32 to vector<8x128xf32>
      %156 = arith.mulf %147, %155 : vector<8x128xf32>
      %157 = arith.addf %156, %15 : vector<8x128xf32>
      %158 = arith.select %149, %15, %157 : vector<8x128xi1>, vector<8x128xf32>
      %cst_67 = arith.constant 2.000000e-01 : f32
      %159 = vector.broadcast %cst_67 : f32 to vector<8x128xf32>
      %160 = arith.cmpf ogt, %158, %159 : vector<8x128xf32>
      %161 = arith.extui %160 : vector<8x128xi1> to vector<8x128xi32>
      %162 = arith.sitofp %161 : vector<8x128xi32> to vector<8x128xf32>
      %c0_68 = arith.constant 0 : index
      %c13 = arith.constant 13 : index
      %c0_69 = arith.constant 0 : index
      %163 = vector.load %arg6[%c0_68, %c13, %c0_69] : memref<8x15x128xf32, #tpu.memory_space<vmem>>, vector<8x1x128xf32>
      %164 = vector.shape_cast %163 : vector<8x1x128xf32> to vector<8x128xf32>
      %165 = vector.shape_cast %162 : vector<8x128xf32> to vector<8x1x128xf32>
      tpu.vector_store %arg6[%c0_68, %c13, %c0_69], %165 {strides = array<i32>} : memref<8x15x128xf32, #tpu.memory_space<vmem>>, vector<8x1x128xf32>,
      %cst_70 = arith.constant 2.000000e-01 : f32
      %166 = vector.broadcast %cst_70 : f32 to vector<8x128xf32>
      %167 = arith.mulf %158, %166 : vector<8x128xf32>
      %168 = arith.addf %167, %15 : vector<8x128xf32>
      %169 = arith.select %160, %15, %168 : vector<8x128xi1>, vector<8x128xf32>
      %cst_71 = arith.constant 2.000000e-01 : f32
      %170 = vector.broadcast %cst_71 : f32 to vector<8x128xf32>
      %171 = arith.cmpf ogt, %169, %170 : vector<8x128xf32>
      %172 = arith.extui %171 : vector<8x128xi1> to vector<8x128xi32>
      %173 = arith.sitofp %172 : vector<8x128xi32> to vector<8x128xf32>
      %c0_72 = arith.constant 0 : index
      %c14 = arith.constant 14 : index
      %c0_73 = arith.constant 0 : index
      %174 = vector.load %arg6[%c0_72, %c14, %c0_73] : memref<8x15x128xf32, #tpu.memory_space<vmem>>, vector<8x1x128xf32>
      %175 = vector.shape_cast %174 : vector<8x1x128xf32> to vector<8x128xf32>
      %176 = vector.shape_cast %173 : vector<8x128xf32> to vector<8x1x128xf32>
      tpu.vector_store %arg6[%c0_72, %c14, %c0_73], %176 {strides = array<i32>} : memref<8x15x128xf32, #tpu.memory_space<vmem>>, vector<8x1x128xf32>,
    } else {
    }
    return
  }
  func.func @transform_0(%arg0: i32, %arg1: i32, %arg2: i32) -> (i32, i32) {
    %c0_i32 = arith.constant 0 : i32
    return %arg0, %arg2 : i32, i32
  }
  func.func @transform_1(%arg0: i32, %arg1: i32, %arg2: i32) -> (i32, i32) {
    %c0_i32 = arith.constant 0 : i32
    return %arg2, %arg1 : i32, i32
  }
  func.func @transform_2(%arg0: i32, %arg1: i32, %arg2: i32) -> (i32, i32) {
    %c0_i32 = arith.constant 0 : i32
    %c0_i32_0 = arith.constant 0 : i32
    return %c0_i32, %arg1 : i32, i32
  }
  func.func @transform_3(%arg0: i32, %arg1: i32, %arg2: i32) -> (i32, i32, i32) {
    %c0_i32 = arith.constant 0 : i32
    %c0_i32_0 = arith.constant 0 : i32
    return %arg0, %c0_i32, %arg1 : i32, i32, i32
  }
}

</mosaic_0001>

<bundles_post_ra>
// kernel: tpu_custom_call.1
= control target key start
LH: loop header
LB: loop body
LE: loop exit
PB: predicated region body
PF: predicated region fallthrough
CT: control target
= control target key end

     0   :  { %8 = vsyncpa [#allocation4], 0  ;;  %s1954_s0 = inlined_call_operand.hbm [shape: f32[8,16], index: 0, kind: input, shape index: {}]   ;;  %s1955_s1 = inlined_call_operand.hbm [shape: f32[16,128], index: 1, kind: input, shape index: {}]   ;;  %s1956_s2 = inlined_call_operand.vmem [shape: f32[1,128], index: 2, kind: input, shape index: {}]   ;;  %s1957_s3 = inlined_call_operand.vmem [shape: f32[8,15,128], index: 3, kind: output, shape index: {}]  }
   0x1   :  { %9 = vsyncpa [#allocation6], 0  ;;  %s1366_s12 = smov [#allocation3]   ;;  %s1367_s14 = smov [#allocation5]  }
   0x2   :  { %s16_s13 = sshll.u32 %s1366_s12, 4  ;;  %s25_s15 = sshll.u32 %s1367_s14, 4  ;;  %s17_s13 = int_to_ptr.vmem [resolvable:$true] %s16_s13  ;;  %s1394_s15 = int_to_ptr.vmem [resolvable:$true] %s25_s15 }
   0x3   :  { %s1318_s18 = scalar_lea.hbm %s1954_s0, 128 }
   0x4   :  { %p1319_p0 = scmp.ne.s32.totalorder %s1954_s0, %s1318_s18  ;;  %p1322_p1 = scmp.lt.u32.totalorder %s1318_s18, %s1954_s0 }
   0x6   :  { %p1324_p2 = pnand %p1322_p1, %p1319_p0 }
   0x8   :  { %1327 = shalt.err (!%p1324_p2)
}
   0x9   :  { %s1328_s23 = scalar_lea.vmem %s17_s13, 128  ;;  %p1333_p4 = scmp.lt.s32.totalorder %s17_s13, %s17_s13 }
   0xa   :  { %p1329_p3 = scmp.ne.s32.totalorder %s17_s13, %s1328_s23  ;;  %p1334_p5 = scmp.lt.s32.totalorder %s1328_s23, %s1328_s23 }
   0xc   :  { %p1335_p6 = por %p1334_p5, %p1333_p4 }
   0xe   :  { %p1336_p7 = pnand %p1335_p6, %p1329_p3 }
  0x10   :  { %1339 = shalt.err (!%p1336_p7)
}
  0x11   :  { %19 = dma.hbm_to_vmem [thread:$0]  %s1954_s0, 128, %s17_s13, [#allocation4]  }
  0x12   :  { %s1340_s28 = scalar_lea.hbm %s1955_s1, 256 }
  0x13   :  { %p1341_p8 = scmp.ne.s32.totalorder %s1955_s1, %s1340_s28  ;;  %p1344_p9 = scmp.lt.u32.totalorder %s1340_s28, %s1955_s1 }
  0x15   :  { %p1346_p10 = pnand %p1344_p9, %p1341_p8 }
  0x17   :  { %1349 = shalt.err (!%p1346_p10)
}
  0x18   :  { %s1350_s6 = scalar_lea.vmem %s1394_s15, 256  ;;  %p1355_p12 = scmp.lt.s32.totalorder %s1394_s15, %s1394_s15 }
  0x19   :  { %p1351_p11 = scmp.ne.s32.totalorder %s1394_s15, %s1350_s6  ;;  %p1356_p13 = scmp.lt.s32.totalorder %s1350_s6, %s1350_s6 }
  0x1b   :  { %p1357_p0 = por %p1356_p13, %p1355_p12 }
  0x1d   :  { %p1358_p1 = pnand %p1357_p0, %p1351_p11 }
  0x1f   :  { %1361 = shalt.err (!%p1358_p1)
}
  0x20   :  { %s1368_s0 = smov 128   ;;  %s1369_s7 = smov 8  }
  0x21   :  { %31 = dma.hbm_to_vmem [thread:$0]  %s1955_s1, 256, %s1394_s15, [#allocation6], %s1368_s0, %s1368_s0, %s1369_s7  }
  0x22   :  { %1362 = dma.done.wait [#allocation4], 128  }
  0x23   :  { %1363 = vsyncadd [#allocation4], 4294967168 }
  0x24   :  { %1364 = dma.done.wait [#allocation6], 256  }
  0x25   :  { %1365 = vsyncadd [#allocation6], 4294967040  ;;  %v1370_v0 = vmov 0.0|0.0   ;;  %vm1371_vm0 = vmmov 0   ;;  %v1372_v1 = vmov 0.0   ;;  %v47_v2 = vld [vmem:[#allocation5] sm:$0xff]  ;;  %v145_v8 = vlaneseq }
  0x26   :  { %1307 = vmatprep.subr.bf16.mxu0 %v1370_v0  ;;  %1304 = vmatprep.mubr.msk.f32.mxu0 %vm1371_vm0, %v1372_v1  ;;  %v48_v3 = vld [vmem:[#allocation5 + $0x8] sm:$0xff]  ;;  %v46_v5 = vld [vmem:[#allocation3] sm:$0xff]  ;;  %vm49_vm1 = vcmask 130048   ;;  %v1373_v6 = vmov 1966171168  }
  0x27   :  { %v1308_v4 = vpack.c.bf16 %v48_v3, %v47_v2  ;;  %v143_v7 = vunpack.c.l.s4 %v1373_v6  ;;  %v146_v10 = vshrl.u32 %v145_v8, 7  ;;  %v1221_v11 = vld [vmem:[%s1956_s2] ss:$0 sm:$0xff] }
  0x29   :  { %1309 = vmatpush3.bf16.msra.mxu0 %v1308_v4  ;;  %v144_v9 = vunpack.c.0.s8 %v143_v7 }
  0x2b   :  { %v1431_v14 = vsub.s32 %v144_v9, %v146_v10 }
  0x2c   :  { %1305 = vmatmul.mubr.msk.f32.vlgmr.msra.gmra.mrb[0].mxu0 %vm49_vm1, %v46_v5 }
  0xff   :  { %v119_v12 = vpop.f32.mrb[0].mxu0 }
 0x100   :  { %v1429_v13 = vadd.f32 %v1221_v11, %v119_v12  ;;  %v1306_v15 = vpop.f32.mrb[1].mxu0 }
 0x102   :  { %vm137_vm2 = vcmp.gt.f32.partialorder %v1429_v13, 0.2  ;;  %v206_v16 = vmul.f32 0.2, %v1429_v13 }
 0x103   :  { %v1222_v17 = vsel %vm137_vm2, 1.0, %v1372_v1 }
 0x104   :  { %v141_v18 = vcombine.high %v1222_v17, %v1222_v17  ;;  %v148_v19 = vrot.slane %v1222_v17, %v1431_v14  ;;  %v207_v20 = vadd.f32 %v206_v16, %v1429_v13 }
 0x106   :  { %v155_v21 = vrot.slane %v141_v18, %v1431_v14  ;;  %v156_v22 = vcombine.high %v148_v19, %v148_v19  ;;  %v164_v23 = vrot.slane %v148_v19, %v1431_v14  ;;  %1223 = vst.sshfl [vmem:[%s1957_s3] sm:$0x1 pattern:$0x73625140] %v148_v19  ;;  %v208_v24 = vsel %vm137_vm2, %v1429_v13, %v207_v20 }
 0x107   :  { %vm209_vm3 = vcmp.gt.f32.partialorder %v208_v24, 0.2  ;;  %v278_v25 = vmul.f32 0.2, %v208_v24 }
 0x108   :  { %v157_v26 = vcombine.high %v155_v21, %v155_v21  ;;  %v171_v27 = vrot.slane %v155_v21, %v1431_v14  ;;  %v178_v28 = vrot.slane %v156_v22, %v1431_v14  ;;  %v186_v29 = vcombine.high %v164_v23, %v164_v23  ;;  %1224 = vst.sshfl [vmem:[%s1957_s3 + $0x10] sm:$0x1 pattern:$0x73625140] %v156_v22 }
 0x109   :  { %1225 = vst.sshfl [vmem:[%s1957_s3 + $0x40] sm:$0x1 pattern:$0x73625140] %v155_v21  ;;  %v1227_v30 = vsel %vm209_vm3, 1.0, %v1372_v1  ;;  %v279_v31 = vadd.f32 %v278_v25, %v1429_v13 }
 0x10a   :  { %v185_v32 = vrot.slane %v157_v26, %v1431_v14  ;;  %v187_v33 = vcombine.high %v171_v27, %v171_v27  ;;  %v188_v34 = vcombine.high %v178_v28, %v178_v28  ;;  %200 = vst [vmem:[%s1957_s3 + $0x20] sm:$0x1] %v186_v29  ;;  %1226 = vst.sshfl [vmem:[%s1957_s3 + $0x50] sm:$0x1 pattern:$0x73625140] %v157_v26 }
 0x10b   :  { %v213_v35 = vcombine.high %v1227_v30, %v1227_v30  ;;  %v220_v36 = vrot.slane %v1227_v30, %v1431_v14  ;;  %v280_v37 = vsel %vm209_vm3, %v1429_v13, %v279_v31 }
 0x10c   :  { %v189_v38 = vcombine.high %v185_v32, %v185_v32  ;;  %201 = vst [vmem:[%s1957_s3 + $0x30] sm:$0x1] %v188_v34  ;;  %204 = vst [vmem:[%s1957_s3 + $0x60] sm:$0x1] %v187_v33  ;;  %vm281_vm4 = vcmp.gt.f32.partialorder %v280_v37, 0.2 }
 0x10d   :  { %v227_v39 = vrot.slane %v213_v35, %v1431_v14  ;;  %v350_v40 = vmul.f32 0.2, %v280_v37  ;;  %v228_v41 = vcombine.high %v220_v36, %v220_v36  ;;  %v236_v42 = vrot.slane %v220_v36, %v1431_v14  ;;  %1228 = vst.sshfl [vmem:[%s1957_s3 + $0x1] sm:$0x1 pattern:$0x73625140] %v220_v36 }
 0x10e   :  { %v1232_v43 = vsel %vm281_vm4, 1.0, %v1372_v1  ;;  %205 = vst [vmem:[%s1957_s3 + $0x70] sm:$0x1] %v189_v38 }
 0x10f   :  { %v229_v44 = vcombine.high %v227_v39, %v227_v39  ;;  %v243_v45 = vrot.slane %v227_v39, %v1431_v14  ;;  %1230 = vst.sshfl [vmem:[%s1957_s3 + $0x41] sm:$0x1 pattern:$0x73625140] %v227_v39  ;;  %v285_v46 = vcombine.high %v1232_v43, %v1232_v43  ;;  %v292_v47 = vrot.slane %v1232_v43, %v1431_v14 }
 0x110   :  { %v250_v48 = vrot.slane %v228_v41, %v1431_v14  ;;  %v258_v49 = vcombine.high %v236_v42, %v236_v42  ;;  %1229 = vst.sshfl [vmem:[%s1957_s3 + $0x11] sm:$0x1 pattern:$0x73625140] %v228_v41  ;;  %v351_v50 = vadd.f32 %v350_v40, %v1429_v13 }
 0x111   :  { %v257_v51 = vrot.slane %v229_v44, %v1431_v14  ;;  %v259_v52 = vcombine.high %v243_v45, %v243_v45  ;;  %1231 = vst.sshfl [vmem:[%s1957_s3 + $0x51] sm:$0x1 pattern:$0x73625140] %v229_v44  ;;  %v299_v53 = vrot.slane %v285_v46, %v1431_v14  ;;  %v300_v54 = vcombine.high %v292_v47, %v292_v47 }
 0x112   :  { %1233 = vst.sshfl [vmem:[%s1957_s3 + $0x2] sm:$0x1 pattern:$0x73625140] %v292_v47  ;;  %v260_v55 = vcombine.high %v250_v48, %v250_v48  ;;  %272 = vst [vmem:[%s1957_s3 + $0x21] sm:$0x1] %v258_v49  ;;  %v308_v56 = vrot.slane %v292_v47, %v1431_v14  ;;  %v352_v57 = vsel %vm281_vm4, %v1429_v13, %v351_v50 }
 0x113   :  { %v261_v58 = vcombine.high %v257_v51, %v257_v51  ;;  %276 = vst [vmem:[%s1957_s3 + $0x61] sm:$0x1] %v259_v52  ;;  %v301_v59 = vcombine.high %v299_v53, %v299_v53  ;;  %v315_v60 = vrot.slane %v299_v53, %v1431_v14  ;;  %v322_v61 = vrot.slane %v300_v54, %v1431_v14 }
 0x114   :  { %1234 = vst.sshfl [vmem:[%s1957_s3 + $0x12] sm:$0x1 pattern:$0x73625140] %v300_v54  ;;  %273 = vst [vmem:[%s1957_s3 + $0x31] sm:$0x1] %v260_v55  ;;  %v330_v62 = vcombine.high %v308_v56, %v308_v56 }
 0x115   :  { %1235 = vst.sshfl [vmem:[%s1957_s3 + $0x42] sm:$0x1 pattern:$0x73625140] %v299_v53  ;;  %vm353_vm5 = vcmp.gt.f32.partialorder %v352_v57, 0.2  ;;  %v329_v0 = vrot.slane %v301_v59, %v1431_v14  ;;  %v331_v2 = vcombine.high %v315_v60, %v315_v60  ;;  %v332_v3 = vcombine.high %v322_v61, %v322_v61 }
 0x116   :  { %v422_v63 = vmul.f32 0.2, %v352_v57  ;;  %277 = vst [vmem:[%s1957_s3 + $0x71] sm:$0x1] %v261_v58  ;;  %v1237_v4 = vsel %vm353_vm5, 1.0, %v1372_v1 }
 0x117   :  { %1236 = vst.sshfl [vmem:[%s1957_s3 + $0x52] sm:$0x1 pattern:$0x73625140] %v301_v59  ;;  %344 = vst [vmem:[%s1957_s3 + $0x22] sm:$0x1] %v330_v62  ;;  %v357_v5 = vcombine.high %v1237_v4, %v1237_v4  ;;  %v364_v6 = vrot.slane %v1237_v4, %v1431_v14  ;;  %v333_v8 = vcombine.high %v329_v0, %v329_v0 }
 0x118   :  { %v423_v7 = vadd.f32 %v422_v63, %v1429_v13  ;;  %345 = vst [vmem:[%s1957_s3 + $0x32] sm:$0x1] %v332_v3  ;;  %348 = vst [vmem:[%s1957_s3 + $0x62] sm:$0x1] %v331_v2 }
 0x119   :  { %v371_v9 = vrot.slane %v357_v5, %v1431_v14  ;;  %v372_v10 = vcombine.high %v364_v6, %v364_v6  ;;  %v380_v11 = vrot.slane %v364_v6, %v1431_v14  ;;  %1238 = vst.sshfl [vmem:[%s1957_s3 + $0x3] sm:$0x1 pattern:$0x73625140] %v364_v6  ;;  %349 = vst [vmem:[%s1957_s3 + $0x72] sm:$0x1] %v333_v8 }
 0x11a   :  { %v424_v12 = vsel %vm353_vm5, %v1429_v13, %v423_v7 }
 0x11b   :  { %vm425_vm6 = vcmp.gt.f32.partialorder %v424_v12, 0.2  ;;  %v494_v15 = vmul.f32 0.2, %v424_v12  ;;  %v373_v16 = vcombine.high %v371_v9, %v371_v9  ;;  %v387_v17 = vrot.slane %v371_v9, %v1431_v14 }
 0x11c   :  { %v394_v18 = vrot.slane %v372_v10, %v1431_v14  ;;  %v402_v19 = vcombine.high %v380_v11, %v380_v11  ;;  %1239 = vst.sshfl [vmem:[%s1957_s3 + $0x13] sm:$0x1 pattern:$0x73625140] %v372_v10  ;;  %v1242_v20 = vsel %vm425_vm6, 1.0, %v1372_v1 }
 0x11d   :  { %1240 = vst.sshfl [vmem:[%s1957_s3 + $0x43] sm:$0x1 pattern:$0x73625140] %v371_v9  ;;  %v495_v21 = vadd.f32 %v494_v15, %v1429_v13  ;;  %v401_v22 = vrot.slane %v373_v16, %v1431_v14  ;;  %v403_v23 = vcombine.high %v387_v17, %v387_v17  ;;  %v429_v25 = vcombine.high %v1242_v20, %v1242_v20 }
 0x11e   :  { %v404_v24 = vcombine.high %v394_v18, %v394_v18  ;;  %416 = vst [vmem:[%s1957_s3 + $0x23] sm:$0x1] %v402_v19  ;;  %1241 = vst.sshfl [vmem:[%s1957_s3 + $0x53] sm:$0x1 pattern:$0x73625140] %v373_v16  ;;  %v436_v26 = vrot.slane %v1242_v20, %v1431_v14 }
 0x11f   :  { %v496_v27 = vsel %vm425_vm6, %v1429_v13, %v495_v21  ;;  %v405_v28 = vcombine.high %v401_v22, %v401_v22  ;;  %420 = vst [vmem:[%s1957_s3 + $0x63] sm:$0x1] %v403_v23  ;;  %v443_v29 = vrot.slane %v429_v25, %v1431_v14 }
 0x120   :  { %417 = vst [vmem:[%s1957_s3 + $0x33] sm:$0x1] %v404_v24  ;;  %vm497_vm7 = vcmp.gt.f32.partialorder %v496_v27, 0.2  ;;  %v566_v30 = vmul.f32 0.2, %v496_v27  ;;  %v444_v31 = vcombine.high %v436_v26, %v436_v26  ;;  %v452_v32 = vrot.slane %v436_v26, %v1431_v14 }
 0x121   :  { %1243 = vst.sshfl [vmem:[%s1957_s3 + $0x4] sm:$0x1 pattern:$0x73625140] %v436_v26  ;;  %v1247_v33 = vsel %vm497_vm7, 1.0, %v1372_v1  ;;  %v445_v34 = vcombine.high %v443_v29, %v443_v29  ;;  %v459_v35 = vrot.slane %v443_v29, %v1431_v14 }
 0x122   :  { %421 = vst [vmem:[%s1957_s3 + $0x73] sm:$0x1] %v405_v28  ;;  %1245 = vst.sshfl [vmem:[%s1957_s3 + $0x44] sm:$0x1 pattern:$0x73625140] %v443_v29  ;;  %v501_v36 = vcombine.high %v1247_v33, %v1247_v33  ;;  %v508_v37 = vrot.slane %v1247_v33, %v1431_v14  ;;  %v466_v38 = vrot.slane %v444_v31, %v1431_v14 }
 0x123   :  { %v474_v39 = vcombine.high %v452_v32, %v452_v32  ;;  %1244 = vst.sshfl [vmem:[%s1957_s3 + $0x14] sm:$0x1 pattern:$0x73625140] %v444_v31  ;;  %v567_v40 = vadd.f32 %v566_v30, %v1429_v13  ;;  %v473_v41 = vrot.slane %v445_v34, %v1431_v14  ;;  %v475_v42 = vcombine.high %v459_v35, %v459_v35 }
 0x124   :  { %1246 = vst.sshfl [vmem:[%s1957_s3 + $0x54] sm:$0x1 pattern:$0x73625140] %v445_v34  ;;  %v515_v43 = vrot.slane %v501_v36, %v1431_v14  ;;  %v516_v44 = vcombine.high %v508_v37, %v508_v37  ;;  %v476_v45 = vcombine.high %v466_v38, %v466_v38  ;;  %v524_v46 = vrot.slane %v508_v37, %v1431_v14 }
 0x125   :  { %1248 = vst.sshfl [vmem:[%s1957_s3 + $0x5] sm:$0x1 pattern:$0x73625140] %v508_v37  ;;  %488 = vst [vmem:[%s1957_s3 + $0x24] sm:$0x1] %v474_v39  ;;  %v568_v47 = vsel %vm497_vm7, %v1429_v13, %v567_v40  ;;  %v477_v48 = vcombine.high %v473_v41, %v473_v41 }
 0x126   :  { %492 = vst [vmem:[%s1957_s3 + $0x64] sm:$0x1] %v475_v42  ;;  %v517_v49 = vcombine.high %v515_v43, %v515_v43  ;;  %v531_v50 = vrot.slane %v515_v43, %v1431_v14  ;;  %v538_v51 = vrot.slane %v516_v44, %v1431_v14  ;;  %1249 = vst.sshfl [vmem:[%s1957_s3 + $0x15] sm:$0x1 pattern:$0x73625140] %v516_v44 }
 0x127   :  { %1250 = vst.sshfl [vmem:[%s1957_s3 + $0x45] sm:$0x1 pattern:$0x73625140] %v515_v43  ;;  %489 = vst [vmem:[%s1957_s3 + $0x34] sm:$0x1] %v476_v45  ;;  %v546_v52 = vcombine.high %v524_v46, %v524_v46 }
 0x128   :  { %vm569_vm8 = vcmp.gt.f32.partialorder %v568_v47, 0.2  ;;  %v638_v53 = vmul.f32 0.2, %v568_v47  ;;  %493 = vst [vmem:[%s1957_s3 + $0x74] sm:$0x1] %v477_v48  ;;  %v545_v54 = vrot.slane %v517_v49, %v1431_v14  ;;  %v547_v55 = vcombine.high %v531_v50, %v531_v50 }
 0x129   :  { %v548_v56 = vcombine.high %v538_v51, %v538_v51  ;;  %1251 = vst.sshfl [vmem:[%s1957_s3 + $0x55] sm:$0x1 pattern:$0x73625140] %v517_v49  ;;  %v1252_v57 = vsel %vm569_vm8, 1.0, %v1372_v1 }
 0x12a   :  { %560 = vst [vmem:[%s1957_s3 + $0x25] sm:$0x1] %v546_v52  ;;  %v573_v58 = vcombine.high %v1252_v57, %v1252_v57  ;;  %v580_v59 = vrot.slane %v1252_v57, %v1431_v14  ;;  %v639_v60 = vadd.f32 %v638_v53, %v1429_v13  ;;  %v549_v61 = vcombine.high %v545_v54, %v545_v54 }
 0x12b   :  { %561 = vst [vmem:[%s1957_s3 + $0x35] sm:$0x1] %v548_v56  ;;  %564 = vst [vmem:[%s1957_s3 + $0x65] sm:$0x1] %v547_v55 }
 0x12c   :  { %v587_v62 = vrot.slane %v573_v58, %v1431_v14  ;;  %v588_v63 = vcombine.high %v580_v59, %v580_v59  ;;  %v596_v0 = vrot.slane %v580_v59, %v1431_v14  ;;  %1253 = vst.sshfl [vmem:[%s1957_s3 + $0x6] sm:$0x1 pattern:$0x73625140] %v580_v59  ;;  %v640_v2 = vsel %vm569_vm8, %v1429_v13, %v639_v60 }
 0x12d   :  { %565 = vst [vmem:[%s1957_s3 + $0x75] sm:$0x1] %v549_v61  ;;  %vm641_vm9 = vcmp.gt.f32.partialorder %v640_v2, 0.2  ;;  %v710_v3 = vmul.f32 0.2, %v640_v2 }
 0x12e   :  { %v589_v4 = vcombine.high %v587_v62, %v587_v62  ;;  %v603_v5 = vrot.slane %v587_v62, %v1431_v14  ;;  %v610_v6 = vrot.slane %v588_v63, %v1431_v14  ;;  %v618_v7 = vcombine.high %v596_v0, %v596_v0  ;;  %1254 = vst.sshfl [vmem:[%s1957_s3 + $0x16] sm:$0x1 pattern:$0x73625140] %v588_v63 }
 0x12f   :  { %1255 = vst.sshfl [vmem:[%s1957_s3 + $0x46] sm:$0x1 pattern:$0x73625140] %v587_v62  ;;  %v1257_v8 = vsel %vm641_vm9, 1.0, %v1372_v1  ;;  %v711_v9 = vadd.f32 %v710_v3, %v1429_v13 }
 0x130   :  { %v617_v10 = vrot.slane %v589_v4, %v1431_v14  ;;  %v619_v11 = vcombine.high %v603_v5, %v603_v5  ;;  %v620_v12 = vcombine.high %v610_v6, %v610_v6  ;;  %632 = vst [vmem:[%s1957_s3 + $0x26] sm:$0x1] %v618_v7  ;;  %1256 = vst.sshfl [vmem:[%s1957_s3 + $0x56] sm:$0x1 pattern:$0x73625140] %v589_v4 }
 0x131   :  { %v645_v15 = vcombine.high %v1257_v8, %v1257_v8  ;;  %v652_v16 = vrot.slane %v1257_v8, %v1431_v14  ;;  %v712_v17 = vsel %vm641_vm9, %v1429_v13, %v711_v9 }
 0x132   :  { %v621_v18 = vcombine.high %v617_v10, %v617_v10  ;;  %633 = vst [vmem:[%s1957_s3 + $0x36] sm:$0x1] %v620_v12  ;;  %636 = vst [vmem:[%s1957_s3 + $0x66] sm:$0x1] %v619_v11  ;;  %vm713_vm10 = vcmp.gt.f32.partialorder %v712_v17, 0.2 }
 0x133   :  { %v659_v19 = vrot.slane %v645_v15, %v1431_v14  ;;  %v782_v20 = vmul.f32 0.2, %v712_v17  ;;  %v660_v21 = vcombine.high %v652_v16, %v652_v16  ;;  %v668_v22 = vrot.slane %v652_v16, %v1431_v14  ;;  %1258 = vst.sshfl [vmem:[%s1957_s3 + $0x7] sm:$0x1 pattern:$0x73625140] %v652_v16 }
 0x134   :  { %v1262_v23 = vsel %vm713_vm10, 1.0, %v1372_v1  ;;  %637 = vst [vmem:[%s1957_s3 + $0x76] sm:$0x1] %v621_v18 }
 0x135   :  { %v661_v24 = vcombine.high %v659_v19, %v659_v19  ;;  %v675_v25 = vrot.slane %v659_v19, %v1431_v14  ;;  %1260 = vst.sshfl [vmem:[%s1957_s3 + $0x47] sm:$0x1 pattern:$0x73625140] %v659_v19  ;;  %v717_v26 = vcombine.high %v1262_v23, %v1262_v23  ;;  %v724_v27 = vrot.slane %v1262_v23, %v1431_v14 }
 0x136   :  { %v682_v28 = vrot.slane %v660_v21, %v1431_v14  ;;  %v690_v29 = vcombine.high %v668_v22, %v668_v22  ;;  %1259 = vst.sshfl [vmem:[%s1957_s3 + $0x17] sm:$0x1 pattern:$0x73625140] %v660_v21  ;;  %v783_v30 = vadd.f32 %v782_v20, %v1429_v13 }
 0x137   :  { %v689_v31 = vrot.slane %v661_v24, %v1431_v14  ;;  %v691_v32 = vcombine.high %v675_v25, %v675_v25  ;;  %1261 = vst.sshfl [vmem:[%s1957_s3 + $0x57] sm:$0x1 pattern:$0x73625140] %v661_v24  ;;  %v731_v33 = vrot.slane %v717_v26, %v1431_v14  ;;  %v732_v34 = vcombine.high %v724_v27, %v724_v27 }
 0x138   :  { %1263 = vst.sshfl [vmem:[%s1957_s3 + $0x8] sm:$0x1 pattern:$0x73625140] %v724_v27  ;;  %v692_v35 = vcombine.high %v682_v28, %v682_v28  ;;  %704 = vst [vmem:[%s1957_s3 + $0x27] sm:$0x1] %v690_v29  ;;  %v740_v36 = vrot.slane %v724_v27, %v1431_v14  ;;  %v784_v37 = vsel %vm713_vm10, %v1429_v13, %v783_v30 }
 0x139   :  { %v693_v38 = vcombine.high %v689_v31, %v689_v31  ;;  %708 = vst [vmem:[%s1957_s3 + $0x67] sm:$0x1] %v691_v32  ;;  %v733_v39 = vcombine.high %v731_v33, %v731_v33  ;;  %v747_v40 = vrot.slane %v731_v33, %v1431_v14  ;;  %v754_v41 = vrot.slane %v732_v34, %v1431_v14 }
 0x13a   :  { %1264 = vst.sshfl [vmem:[%s1957_s3 + $0x18] sm:$0x1 pattern:$0x73625140] %v732_v34  ;;  %705 = vst [vmem:[%s1957_s3 + $0x37] sm:$0x1] %v692_v35  ;;  %v762_v42 = vcombine.high %v740_v36, %v740_v36 }
 0x13b   :  { %1265 = vst.sshfl [vmem:[%s1957_s3 + $0x48] sm:$0x1 pattern:$0x73625140] %v731_v33  ;;  %vm785_vm11 = vcmp.gt.f32.partialorder %v784_v37, 0.2  ;;  %v761_v44 = vrot.slane %v733_v39, %v1431_v14  ;;  %v763_v45 = vcombine.high %v747_v40, %v747_v40  ;;  %v764_v46 = vcombine.high %v754_v41, %v754_v41 }
 0x13c   :  { %v854_v43 = vmul.f32 0.2, %v784_v37  ;;  %709 = vst [vmem:[%s1957_s3 + $0x77] sm:$0x1] %v693_v38  ;;  %v1267_v47 = vsel %vm785_vm11, 1.0, %v1372_v1 }
 0x13d   :  { %1266 = vst.sshfl [vmem:[%s1957_s3 + $0x58] sm:$0x1 pattern:$0x73625140] %v733_v39  ;;  %776 = vst [vmem:[%s1957_s3 + $0x28] sm:$0x1] %v762_v42  ;;  %v789_v48 = vcombine.high %v1267_v47, %v1267_v47  ;;  %v796_v49 = vrot.slane %v1267_v47, %v1431_v14  ;;  %v765_v51 = vcombine.high %v761_v44, %v761_v44 }
 0x13e   :  { %v855_v50 = vadd.f32 %v854_v43, %v1429_v13  ;;  %777 = vst [vmem:[%s1957_s3 + $0x38] sm:$0x1] %v764_v46  ;;  %780 = vst [vmem:[%s1957_s3 + $0x68] sm:$0x1] %v763_v45 }
 0x13f   :  { %v803_v52 = vrot.slane %v789_v48, %v1431_v14  ;;  %v804_v53 = vcombine.high %v796_v49, %v796_v49  ;;  %v812_v54 = vrot.slane %v796_v49, %v1431_v14  ;;  %1268 = vst.sshfl [vmem:[%s1957_s3 + $0x9] sm:$0x1 pattern:$0x73625140] %v796_v49  ;;  %781 = vst [vmem:[%s1957_s3 + $0x78] sm:$0x1] %v765_v51 }
 0x140   :  { %v856_v55 = vsel %vm785_vm11, %v1429_v13, %v855_v50 }
 0x141   :  { %vm857_vm12 = vcmp.gt.f32.partialorder %v856_v55, 0.2  ;;  %v926_v56 = vmul.f32 0.2, %v856_v55  ;;  %v805_v57 = vcombine.high %v803_v52, %v803_v52  ;;  %v819_v58 = vrot.slane %v803_v52, %v1431_v14 }
 0x142   :  { %v826_v59 = vrot.slane %v804_v53, %v1431_v14  ;;  %v834_v60 = vcombine.high %v812_v54, %v812_v54  ;;  %1269 = vst.sshfl [vmem:[%s1957_s3 + $0x19] sm:$0x1 pattern:$0x73625140] %v804_v53  ;;  %v1272_v61 = vsel %vm857_vm12, 1.0, %v1372_v1 }
 0x143   :  { %1270 = vst.sshfl [vmem:[%s1957_s3 + $0x49] sm:$0x1 pattern:$0x73625140] %v803_v52  ;;  %v927_v62 = vadd.f32 %v926_v56, %v1429_v13  ;;  %v833_v63 = vrot.slane %v805_v57, %v1431_v14  ;;  %v835_v0 = vcombine.high %v819_v58, %v819_v58  ;;  %v861_v3 = vcombine.high %v1272_v61, %v1272_v61 }
 0x144   :  { %v836_v2 = vcombine.high %v826_v59, %v826_v59  ;;  %848 = vst [vmem:[%s1957_s3 + $0x29] sm:$0x1] %v834_v60  ;;  %1271 = vst.sshfl [vmem:[%s1957_s3 + $0x59] sm:$0x1 pattern:$0x73625140] %v805_v57  ;;  %v868_v4 = vrot.slane %v1272_v61, %v1431_v14 }
 0x145   :  { %v928_v5 = vsel %vm857_vm12, %v1429_v13, %v927_v62  ;;  %v837_v6 = vcombine.high %v833_v63, %v833_v63  ;;  %852 = vst [vmem:[%s1957_s3 + $0x69] sm:$0x1] %v835_v0  ;;  %v875_v7 = vrot.slane %v861_v3, %v1431_v14 }
 0x146   :  { %849 = vst [vmem:[%s1957_s3 + $0x39] sm:$0x1] %v836_v2  ;;  %vm929_vm13 = vcmp.gt.f32.partialorder %v928_v5, 0.2  ;;  %v998_v8 = vmul.f32 0.2, %v928_v5  ;;  %v876_v9 = vcombine.high %v868_v4, %v868_v4  ;;  %v884_v10 = vrot.slane %v868_v4, %v1431_v14 }
 0x147   :  { %1273 = vst.sshfl [vmem:[%s1957_s3 + $0xa] sm:$0x1 pattern:$0x73625140] %v868_v4  ;;  %v1277_v11 = vsel %vm929_vm13, 1.0, %v1372_v1  ;;  %v877_v12 = vcombine.high %v875_v7, %v875_v7  ;;  %v891_v15 = vrot.slane %v875_v7, %v1431_v14 }
 0x148   :  { %853 = vst [vmem:[%s1957_s3 + $0x79] sm:$0x1] %v837_v6  ;;  %1275 = vst.sshfl [vmem:[%s1957_s3 + $0x4a] sm:$0x1 pattern:$0x73625140] %v875_v7  ;;  %v933_v16 = vcombine.high %v1277_v11, %v1277_v11  ;;  %v940_v17 = vrot.slane %v1277_v11, %v1431_v14  ;;  %v898_v18 = vrot.slane %v876_v9, %v1431_v14 }
 0x149   :  { %v906_v19 = vcombine.high %v884_v10, %v884_v10  ;;  %1274 = vst.sshfl [vmem:[%s1957_s3 + $0x1a] sm:$0x1 pattern:$0x73625140] %v876_v9  ;;  %v999_v20 = vadd.f32 %v998_v8, %v1429_v13  ;;  %v905_v21 = vrot.slane %v877_v12, %v1431_v14  ;;  %v907_v22 = vcombine.high %v891_v15, %v891_v15 }
 0x14a   :  { %1276 = vst.sshfl [vmem:[%s1957_s3 + $0x5a] sm:$0x1 pattern:$0x73625140] %v877_v12  ;;  %v947_v23 = vrot.slane %v933_v16, %v1431_v14  ;;  %v948_v24 = vcombine.high %v940_v17, %v940_v17  ;;  %v908_v25 = vcombine.high %v898_v18, %v898_v18  ;;  %v956_v26 = vrot.slane %v940_v17, %v1431_v14 }
 0x14b   :  { %1278 = vst.sshfl [vmem:[%s1957_s3 + $0xb] sm:$0x1 pattern:$0x73625140] %v940_v17  ;;  %920 = vst [vmem:[%s1957_s3 + $0x2a] sm:$0x1] %v906_v19  ;;  %v1000_v27 = vsel %vm929_vm13, %v1429_v13, %v999_v20  ;;  %v909_v28 = vcombine.high %v905_v21, %v905_v21 }
 0x14c   :  { %924 = vst [vmem:[%s1957_s3 + $0x6a] sm:$0x1] %v907_v22  ;;  %v949_v29 = vcombine.high %v947_v23, %v947_v23  ;;  %v963_v30 = vrot.slane %v947_v23, %v1431_v14  ;;  %v970_v31 = vrot.slane %v948_v24, %v1431_v14  ;;  %1279 = vst.sshfl [vmem:[%s1957_s3 + $0x1b] sm:$0x1 pattern:$0x73625140] %v948_v24 }
 0x14d   :  { %1280 = vst.sshfl [vmem:[%s1957_s3 + $0x4b] sm:$0x1 pattern:$0x73625140] %v947_v23  ;;  %921 = vst [vmem:[%s1957_s3 + $0x3a] sm:$0x1] %v908_v25  ;;  %v978_v32 = vcombine.high %v956_v26, %v956_v26 }
 0x14e   :  { %vm1001_vm14 = vcmp.gt.f32.partialorder %v1000_v27, 0.2  ;;  %v1070_v33 = vmul.f32 0.2, %v1000_v27  ;;  %925 = vst [vmem:[%s1957_s3 + $0x7a] sm:$0x1] %v909_v28  ;;  %v977_v34 = vrot.slane %v949_v29, %v1431_v14  ;;  %v979_v35 = vcombine.high %v963_v30, %v963_v30 }
 0x14f   :  { %v980_v36 = vcombine.high %v970_v31, %v970_v31  ;;  %1281 = vst.sshfl [vmem:[%s1957_s3 + $0x5b] sm:$0x1 pattern:$0x73625140] %v949_v29  ;;  %v1282_v37 = vsel %vm1001_vm14, 1.0, %v1372_v1 }
 0x150   :  { %992 = vst [vmem:[%s1957_s3 + $0x2b] sm:$0x1] %v978_v32  ;;  %v1005_v38 = vcombine.high %v1282_v37, %v1282_v37  ;;  %v1012_v39 = vrot.slane %v1282_v37, %v1431_v14  ;;  %v1071_v40 = vadd.f32 %v1070_v33, %v1429_v13  ;;  %v981_v41 = vcombine.high %v977_v34, %v977_v34 }
 0x151   :  { %993 = vst [vmem:[%s1957_s3 + $0x3b] sm:$0x1] %v980_v36  ;;  %996 = vst [vmem:[%s1957_s3 + $0x6b] sm:$0x1] %v979_v35 }
 0x152   :  { %v1019_v42 = vrot.slane %v1005_v38, %v1431_v14  ;;  %v1020_v43 = vcombine.high %v1012_v39, %v1012_v39  ;;  %v1028_v44 = vrot.slane %v1012_v39, %v1431_v14  ;;  %1283 = vst.sshfl [vmem:[%s1957_s3 + $0xc] sm:$0x1 pattern:$0x73625140] %v1012_v39  ;;  %v1072_v45 = vsel %vm1001_vm14, %v1429_v13, %v1071_v40 }
 0x153   :  { %997 = vst [vmem:[%s1957_s3 + $0x7b] sm:$0x1] %v981_v41  ;;  %vm1073_vm15 = vcmp.gt.f32.partialorder %v1072_v45, 0.2  ;;  %v1142_v46 = vmul.f32 0.2, %v1072_v45 }
 0x154   :  { %v1021_v47 = vcombine.high %v1019_v42, %v1019_v42  ;;  %v1035_v48 = vrot.slane %v1019_v42, %v1431_v14  ;;  %v1042_v49 = vrot.slane %v1020_v43, %v1431_v14  ;;  %v1050_v50 = vcombine.high %v1028_v44, %v1028_v44  ;;  %1284 = vst.sshfl [vmem:[%s1957_s3 + $0x1c] sm:$0x1 pattern:$0x73625140] %v1020_v43 }
 0x155   :  { %1285 = vst.sshfl [vmem:[%s1957_s3 + $0x4c] sm:$0x1 pattern:$0x73625140] %v1019_v42  ;;  %v1287_v51 = vsel %vm1073_vm15, 1.0, %v1372_v1  ;;  %v1143_v52 = vadd.f32 %v1142_v46, %v1429_v13 }
 0x156   :  { %v1049_v53 = vrot.slane %v1021_v47, %v1431_v14  ;;  %v1051_v54 = vcombine.high %v1035_v48, %v1035_v48  ;;  %v1052_v55 = vcombine.high %v1042_v49, %v1042_v49  ;;  %1064 = vst [vmem:[%s1957_s3 + $0x2c] sm:$0x1] %v1050_v50  ;;  %1286 = vst.sshfl [vmem:[%s1957_s3 + $0x5c] sm:$0x1 pattern:$0x73625140] %v1021_v47 }
 0x157   :  { %v1077_v56 = vcombine.high %v1287_v51, %v1287_v51  ;;  %v1084_v57 = vrot.slane %v1287_v51, %v1431_v14  ;;  %v1144_v58 = vsel %vm1073_vm15, %v1429_v13, %v1143_v52 }
 0x158   :  { %v1053_v59 = vcombine.high %v1049_v53, %v1049_v53  ;;  %1065 = vst [vmem:[%s1957_s3 + $0x3c] sm:$0x1] %v1052_v55  ;;  %1068 = vst [vmem:[%s1957_s3 + $0x6c] sm:$0x1] %v1051_v54  ;;  %vm1145_vm0 = vcmp.gt.f32.partialorder %v1144_v58, 0.2 }
 0x159   :  { %v1091_v60 = vrot.slane %v1077_v56, %v1431_v14  ;;  %v1092_v61 = vcombine.high %v1084_v57, %v1084_v57  ;;  %v1100_v62 = vrot.slane %v1084_v57, %v1431_v14  ;;  %1288 = vst.sshfl [vmem:[%s1957_s3 + $0xd] sm:$0x1 pattern:$0x73625140] %v1084_v57  ;;  %v1292_v13 = vsel %vm1145_vm0, 1.0, %v1372_v1 }
 0x15a   :  { %1069 = vst [vmem:[%s1957_s3 + $0x7c] sm:$0x1] %v1053_v59  ;;  %v1149_v2 = vcombine.high %v1292_v13, %v1292_v13  ;;  %v1156_v3 = vrot.slane %v1292_v13, %v1431_v14 }
 0x15b   :  { %v1093_v63 = vcombine.high %v1091_v60, %v1091_v60  ;;  %v1107_v0 = vrot.slane %v1091_v60, %v1431_v14  ;;  %1290 = vst.sshfl [vmem:[%s1957_s3 + $0x4d] sm:$0x1 pattern:$0x73625140] %v1091_v60  ;;  %v1114_v4 = vrot.slane %v1092_v61, %v1431_v14  ;;  %v1122_v5 = vcombine.high %v1100_v62, %v1100_v62 }
 0x15c   :  { %1289 = vst.sshfl [vmem:[%s1957_s3 + $0x1d] sm:$0x1 pattern:$0x73625140] %v1092_v61  ;;  %v1163_v7 = vrot.slane %v1149_v2, %v1431_v14  ;;  %v1164_v8 = vcombine.high %v1156_v3, %v1156_v3  ;;  %v1172_v10 = vrot.slane %v1156_v3, %v1431_v14 }
 0x15d   :  { %v1121_v1 = vrot.slane %v1093_v63, %v1431_v14  ;;  %v1123_v6 = vcombine.high %v1107_v0, %v1107_v0  ;;  %1291 = vst.sshfl [vmem:[%s1957_s3 + $0x5d] sm:$0x1 pattern:$0x73625140] %v1093_v63  ;;  %v1124_v9 = vcombine.high %v1114_v4, %v1114_v4  ;;  %1136 = vst [vmem:[%s1957_s3 + $0x2d] sm:$0x1] %v1122_v5 }
 0x15e   :  { %1293 = vst.sshfl [vmem:[%s1957_s3 + $0xe] sm:$0x1 pattern:$0x73625140] %v1156_v3  ;;  %v1165_v12 = vcombine.high %v1163_v7, %v1163_v7  ;;  %v1179_v15 = vrot.slane %v1163_v7, %v1431_v14  ;;  %v1186_v16 = vrot.slane %v1164_v8, %v1431_v14  ;;  %v1194_v17 = vcombine.high %v1172_v10, %v1172_v10 }
 0x15f   :  { %v1125_v11 = vcombine.high %v1121_v1, %v1121_v1  ;;  %1140 = vst [vmem:[%s1957_s3 + $0x6d] sm:$0x1] %v1123_v6  ;;  %1294 = vst.sshfl [vmem:[%s1957_s3 + $0x1e] sm:$0x1 pattern:$0x73625140] %v1164_v8 }
 0x160   :  { %1295 = vst.sshfl [vmem:[%s1957_s3 + $0x4e] sm:$0x1 pattern:$0x73625140] %v1163_v7  ;;  %1137 = vst [vmem:[%s1957_s3 + $0x3d] sm:$0x1] %v1124_v9  ;;  %v1193_v18 = vrot.slane %v1165_v12, %v1431_v14  ;;  %v1195_v19 = vcombine.high %v1179_v15, %v1179_v15  ;;  %v1196_v20 = vcombine.high %v1186_v16, %v1186_v16 }
 0x161   :  { %1141 = vst [vmem:[%s1957_s3 + $0x7d] sm:$0x1] %v1125_v11  ;;  %1296 = vst.sshfl [vmem:[%s1957_s3 + $0x5e] sm:$0x1 pattern:$0x73625140] %v1165_v12 }
 0x162   :  { %1208 = vst [vmem:[%s1957_s3 + $0x2e] sm:$0x1] %v1194_v17  ;;  %v1197_v21 = vcombine.high %v1193_v18, %v1193_v18  ;;  %1209 = vst [vmem:[%s1957_s3 + $0x3e] sm:$0x1] %v1196_v20 }
 0x163   :  { %1212 = vst [vmem:[%s1957_s3 + $0x6e] sm:$0x1] %v1195_v19 }
 0x164   :  { %1213 = vst [vmem:[%s1957_s3 + $0x7e] sm:$0x1] %v1197_v21 }
 0x165   :  { %1218 = vsyncpa [#allocation4], 1 }
 0x166   :  { %1219 = vsyncpa [#allocation6], 1 }

</bundles_post_ra>
